<compile_context>
chip_gen: v7x
topology: tpu7x:2x2x1
jax: 0.10.0
libtpu: 0.0.40
codegen_flags: <defaults>
</compile_context>

<pallas_src>
import functools
import math

import jax
import jax.numpy as jnp
from jax.experimental import pallas as pl
from jax.experimental.pallas import tpu as pltpu


def _wce_kernel(x_ref, y_ref, w_ref, o_ref, *, eps, batch, block_rows):
    # Cast in-kernel (VPU has slack; bf16 callers move half the HBM bytes).
    xb = x_ref[...].astype(jnp.float32)          # (TB, C)
    yb = y_ref[...].astype(jnp.float32)          # (TB, C)
    wb = w_ref[...].astype(jnp.float32)          # (1, C) broadcasts over rows

    # Mask the padded tail rows of the last (cdiv) tile: zero both logits and
    # targets so garbage in the overhang can never contribute (or NaN-poison).
    row0 = pl.program_id(0) * block_rows
    rows = row0 + jax.lax.broadcasted_iota(jnp.int32, xb.shape, 0)
    valid = rows < batch
    xb = jnp.where(valid, xb, 0.0)
    yb = jnp.where(valid, yb, 0.0)

    # Numerically-stable log-softmax; clamp in log space.
    # log(max(softmax(x), eps)) == max(log_softmax(x), log(eps)).
    m = jnp.max(xb, axis=-1, keepdims=True)
    shifted = xb - m
    denom = jnp.sum(jnp.exp(shifted), axis=-1, keepdims=True)   # one exp / elem
    logp = shifted - jnp.log(denom)                             # one log / row
    logp = jnp.maximum(logp, math.log(eps))

    loss_elems = (-yb) * logp * wb               # (TB, C)

    # Pre-reduce TB rows onto 8 sublanes -> full (8, C) vreg-aligned store
    # (no masked vst); cross-lane reduce + /B happen once outside the kernel.
    tb, c = loss_elems.shape
    o_ref[...] = jnp.sum(loss_elems.reshape(tb // 8, 8, c), axis=0)


def _round_up(n, m):
    return ((n + m - 1) // m) * m


def _pick_block_rows(batch, num_classes, in_itemsize,
                     vmem_budget_bytes=28 << 20):
    """Rows per tile sized against a conservative VMEM budget.

    Counts 2 streamed inputs x 2-deep double buffering (input dtype) plus
    ~4 materialized f32 (TB, C) intermediates (xb/yb/logp/loss_elems).
    28 MiB keeps us under the 48 MiB scoped limit we request, which itself is
    safely under v7x's 64 MiB per-TC physical VMEM.
    """
    per_row = num_classes * (4 * in_itemsize + 4 * 4)
    tb = max(8, (vmem_budget_bytes // per_row) // 8 * 8)
    tb = min(tb, 4096)                       # per-step overhead already amortized
    tb = min(tb, _round_up(batch, 8))        # never larger than the padded batch
    return tb


def weighted_cross_entropy_loss(x, y, weight=None, eps=1e-8, block_rows=None):
    """Pallas equivalent of WeightedCrossEntropyLoss.forward.

    x: (B, C) logits, y: (B, C) targets (one-hot or soft), weight: (C,).
    """
    B, C = x.shape
    if weight is None:
        weight = jnp.ones((C,), dtype=jnp.float32)
    w2d = weight.reshape(1, C)

    itemsize = max(jnp.dtype(x.dtype).itemsize, jnp.dtype(y.dtype).itemsize)
    if block_rows is None:
        block_rows = _pick_block_rows(B, C, itemsize)
    block_rows = max(8, (int(block_rows) // 8) * 8)   # multiple of 8 sublanes
    num_tiles = pl.cdiv(B, block_rows)                # cdiv grid + in-kernel mask

    cost = pl.CostEstimate(
        flops=6 * B * C,
        transcendentals=B * C + B,
        bytes_accessed=(x.size * jnp.dtype(x.dtype).itemsize
                        + y.size * jnp.dtype(y.dtype).itemsize
                        + C * 4 + num_tiles * 8 * C * 4),
    )

    partials = pl.pallas_call(
        functools.partial(_wce_kernel, eps=eps, batch=B, block_rows=block_rows),
        out_shape=jax.ShapeDtypeStruct((num_tiles * 8, C), jnp.float32),
        grid=(num_tiles,),
        in_specs=[
            pl.BlockSpec((block_rows, C), lambda i: (i, 0)),
            pl.BlockSpec((block_rows, C), lambda i: (i, 0)),
            pl.BlockSpec((1, C), lambda i: (0, 0)),   # weight stays resident
        ],
        out_specs=pl.BlockSpec((8, C), lambda i: (i, 0)),
        compiler_params=pltpu.CompilerParams(
            dimension_semantics=("parallel",),
            vmem_limit_bytes=48 << 20,
        ),
        cost_estimate=cost,
    )(x, y, w2d)

    # Tiny final reduction + mean over batch (== sum of all partials / B).
    return jnp.sum(partials) / B


def weighted_cross_entropy_ref(x, y, weight=None, eps=1e-8):
    probs = jnp.maximum(jax.nn.softmax(x.astype(jnp.float32), axis=-1), eps)
    logp = jnp.log(probs)
    loss = -y.astype(jnp.float32) * logp
    if weight is not None:
        loss = loss * weight.reshape(1, -1).astype(jnp.float32)
    return jnp.mean(jnp.sum(loss, axis=-1))


if __name__ == "__main__":
    key = jax.random.PRNGKey(0)
    kx, ky, kw = jax.random.split(key, 3)

    B, C = 32, 128  # batch_size, num_classes
    x = jax.random.normal(kx, (B, C), dtype=jnp.float32)
    labels = jax.random.randint(ky, (B,), 0, C)
    y = jax.nn.one_hot(labels, C, dtype=jnp.float32)          # one-hot targets
    weight = jax.random.uniform(kw, (C,), dtype=jnp.float32) + 0.5

    # block_rows=8 -> grid=(4,) so the tiled / pipelined path is exercised.
    loss = weighted_cross_entropy_loss(x, y, weight, block_rows=8)
    jax.block_until_ready(loss)
    ref = weighted_cross_entropy_ref(x, y, weight)
    assert jnp.allclose(loss, ref, rtol=1e-5, atol=1e-5), (loss, ref)

    # Non-divisible batch -> exercises the cdiv grid + tail-row masking path.
    Bo = 27
    xo = jax.random.normal(kx, (Bo, C), dtype=jnp.float32)
    yo = jax.nn.one_hot(jax.random.randint(ky, (Bo,), 0, C), C, dtype=jnp.float32)
    loss_o = weighted_cross_entropy_loss(xo, yo, weight, block_rows=8)
    jax.block_until_ready(loss_o)
    ref_o = weighted_cross_entropy_ref(xo, yo, weight)
    assert jnp.allclose(loss_o, ref_o, rtol=1e-5, atol=1e-5), (loss_o, ref_o)

    # weight=None path with the auto-picked tile size, plus bf16 inputs.
    loss_nw = weighted_cross_entropy_loss(x.astype(jnp.bfloat16),
                                          y.astype(jnp.bfloat16), None)
    jax.block_until_ready(loss_nw)
    ref_nw = weighted_cross_entropy_ref(x, y, None)
    assert jnp.allclose(loss_nw, ref_nw, rtol=2e-2, atol=2e-2), (loss_nw, ref_nw)

    print("KERNEL_OK")
</pallas_src>

<mosaic_0001>
module attributes {stable_mosaic.version = 11 : i64} {
  func.func @_wce_kernel(%arg0: i32, %arg1: memref<8x128xf32, #tpu.memory_space<vmem>>, %arg2: memref<8x128xf32, #tpu.memory_space<vmem>>, %arg3: memref<1x128xf32, #tpu.memory_space<vmem>>, %arg4: memref<8x128xf32, #tpu.memory_space<vmem>>) attributes {dimension_semantics = [#tpu.dimension_semantics<parallel>], iteration_bounds = array<i64: 4>, scalar_prefetch = 0 : i64, scratch_operands = 0 : i64, tpu.core_type = #tpu.core_type<tc>, window_params = [{transform_indices = @transform_0, window_bounds = array<i64: 8, 128>}, {transform_indices = @transform_1, window_bounds = array<i64: 8, 128>}, {pipeline_mode = #tpu.pipeline_mode<synchronous>, transform_indices = @transform_2, window_bounds = array<i64: 1, 128>}, {transform_indices = @transform_3, window_bounds = array<i64: 8, 128>}]} {
    %c0 = arith.constant 0 : index
    %c0_0 = arith.constant 0 : index
    %0 = vector.load %arg1[%c0, %c0_0] : memref<8x128xf32, #tpu.memory_space<vmem>>, vector<8x128xf32>
    %c0_1 = arith.constant 0 : index
    %c0_2 = arith.constant 0 : index
    %1 = vector.load %arg2[%c0_1, %c0_2] : memref<8x128xf32, #tpu.memory_space<vmem>>, vector<8x128xf32>
    %c0_3 = arith.constant 0 : index
    %c0_4 = arith.constant 0 : index
    %2 = vector.load %arg3[%c0_3, %c0_4] : memref<1x128xf32, #tpu.memory_space<vmem>>, vector<1x128xf32>
    %c8_i32 = arith.constant 8 : i32
    %3 = arith.muli %arg0, %c8_i32 : i32
    %4 = tpu.iota {dimensions = array<i32: 0>} : vector<8x128xi32>
    %5 = vector.broadcast %3 : i32 to vector<8x128xi32>
    %6 = arith.addi %5, %4 : vector<8x128xi32>
    %c32_i32 = arith.constant 32 : i32
    %7 = vector.broadcast %c32_i32 : i32 to vector<8x128xi32>
    %8 = arith.cmpi slt, %6, %7 : vector<8x128xi32>
    %cst = arith.constant 0.000000e+00 : f32
    %9 = vector.broadcast %cst : f32 to vector<8x128xf32>
    %10 = arith.select %8, %0, %9 : vector<8x128xi1>, vector<8x128xf32>
    %cst_5 = arith.constant 0.000000e+00 : f32
    %11 = vector.broadcast %cst_5 : f32 to vector<8x128xf32>
    %12 = arith.select %8, %1, %11 : vector<8x128xi1>, vector<8x128xf32>
    %cst_6 = arith.constant dense<0xFF800000> : vector<8xf32>
    %13 = vector.multi_reduction <maximumf>, %10, %cst_6 [1] : vector<8x128xf32> to vector<8xf32>
    %14 = vector.shape_cast %13 : vector<8xf32> to vector<8x1xf32>
    %15 = vector.broadcast %14 : vector<8x1xf32> to vector<8x128xf32>
    %16 = arith.subf %10, %15 : vector<8x128xf32>
    %17 = math.exp %16 : vector<8x128xf32>
    %cst_7 = arith.constant dense<0.000000e+00> : vector<8xf32>
    %18 = vector.multi_reduction <add>, %17, %cst_7 [1] : vector<8x128xf32> to vector<8xf32>
    %19 = vector.shape_cast %18 : vector<8xf32> to vector<8x1xf32>
    %20 = math.log %19 : vector<8x1xf32>
    %21 = vector.broadcast %20 : vector<8x1xf32> to vector<8x128xf32>
    %22 = arith.subf %16, %21 : vector<8x128xf32>
    %cst_8 = arith.constant -18.420681 : f32
    %23 = vector.broadcast %cst_8 : f32 to vector<8x128xf32>
    %24 = arith.maximumf %22, %23 : vector<8x128xf32>
    %cst_9 = arith.constant 0.000000e+00 : f32
    %25 = vector.broadcast %cst_9 : f32 to vector<8x128xf32>
    %26 = arith.subf %25, %12 : vector<8x128xf32>
    %27 = arith.mulf %26, %24 : vector<8x128xf32>
    %28 = vector.broadcast %2 : vector<1x128xf32> to vector<8x128xf32>
    %29 = arith.mulf %27, %28 : vector<8x128xf32>
    %30 = vector.shape_cast %29 : vector<8x128xf32> to vector<1x8x128xf32>
    %cst_10 = arith.constant dense<0.000000e+00> : vector<8x128xf32>
    %31 = vector.multi_reduction <add>, %30, %cst_10 [0] : vector<1x8x128xf32> to vector<8x128xf32>
    %c0_11 = arith.constant 0 : index
    %c0_12 = arith.constant 0 : index
    %32 = vector.load %arg4[%c0_11, %c0_12] : memref<8x128xf32, #tpu.memory_space<vmem>>, vector<8x128xf32>
    tpu.vector_store %arg4[%c0_11, %c0_12], %31 {strides = array<i32>} : memref<8x128xf32, #tpu.memory_space<vmem>>, vector<8x128xf32>,
    return
  }
  func.func @transform_0(%arg0: i32) -> (i32, i32) {
    %c0_i32 = arith.constant 0 : i32
    %c0_i32_0 = arith.constant 0 : i32
    return %arg0, %c0_i32 : i32, i32
  }
  func.func @transform_1(%arg0: i32) -> (i32, i32) {
    %c0_i32 = arith.constant 0 : i32
    %c0_i32_0 = arith.constant 0 : i32
    return %arg0, %c0_i32 : i32, i32
  }
  func.func @transform_2(%arg0: i32) -> (i32, i32) {
    %c0_i32 = arith.constant 0 : i32
    %c0_i32_0 = arith.constant 0 : i32
    %c0_i32_1 = arith.constant 0 : i32
    return %c0_i32, %c0_i32_0 : i32, i32
  }
  func.func @transform_3(%arg0: i32) -> (i32, i32) {
    %c0_i32 = arith.constant 0 : i32
    %c0_i32_0 = arith.constant 0 : i32
    return %arg0, %c0_i32 : i32, i32
  }
}

</mosaic_0001>

<bundles_post_ra>
// kernel: tpu_custom_call.1
= control target key start
LH: loop header
LB: loop body
LE: loop exit
PB: predicated region body
PF: predicated region fallthrough
CT: control target
= control target key end

     0   :  { %8 = vsyncpa [#allocation3], 0  ;;  %s806_s0 = inlined_call_operand.hbm [shape: f32[32,128], index: 0, kind: input, shape index: {}]   ;;  %s807_s1 = inlined_call_operand.hbm [shape: f32[32,128], index: 1, kind: input, shape index: {}]   ;;  %s808_s2 = inlined_call_operand.vmem [shape: f32[1,128], index: 2, kind: input, shape index: {}]   ;;  %s809_s3 = inlined_call_operand.hbm [shape: f32[32,128], index: 3, kind: output, shape index: {}]  }
   0x1   :  { %10 = vsyncpa [#allocation3 + $0x1], 0 }
   0x2   :  { %11 = vsyncpa [#allocation6], 0 }
   0x3   :  { %13 = vsyncpa [#allocation6 + $0x1], 0 }
   0x4   :  { %14 = vsyncpa [#allocation4], 0 }
   0x5   :  { %16 = vsyncpa [#allocation4 + $0x1], 0  ;;  %s590_s12 = smov 0   ;;  %s592_s13 = smov 0  }
   0x6   :  { %s594_s14 = smov 0   ;;  %s596_s15 = smov 0  }
   0x7 LB: > { %s611_s16 = sadd.s32 4294967295, %s565_s15   ;;  %s363_s17 = sadd.s32 4294967294, %s565_s15   ;;  %s565_s15 = sphi %s596_s15, %s827_s15   ;;  %s561_s14 = sphi %s594_s14, %s826_s14   ;;  %s557_s13 = sphi %s592_s13, %s825_s13   ;;  %s553_s12 = sphi %s590_s12, %s824_s12  }
   0x8   : > { %s615_s18 = sadd.s32 1, %s565_s15   ;;  %s29_s19 = sadd.s32 1, %s561_s14 }
   0x9   : > { %s26_s20 = ssub.s32 %s565_s15, %s615_s18  ;;  %p36_p0 = scmp.ne.s32.totalorder %s561_s14, %s557_s13 }
   0xa   : > { %p27_p1 = scmp.eq.s32.totalorder %s26_s20, 0  ;;  %p37_p2 = scmp.eq.s32.totalorder %s565_s15, 0 }
   0xb   : > { %p42_p3 = scmp.ne.s32.totalorder %s557_s13, %s553_s12  ;;  %p43_p4 = scmp.eq.s32.totalorder %s611_s16, 0 }
   0xc   : > { %s627_s21 = scalar_select %p27_p1, %s561_s14, %s29_s19  }
   0xd   : > { %p629_p5 = por %p37_p2, %p36_p0  ;;  %p633_p6 = por %p43_p4, %p42_p3 }
   0xe   : > { %p113_p7 = scmp.eq.s32.totalorder %s611_s16, 3  ;;  %p119_p8 = scmp.eq.s32.totalorder %s363_s17, 3 }
   0xf   : > { %s813_s23 = scalar_select %p633_p6, 1, 0 }
  0x10   : > { %p397_p9 = scmp.lt.s32.totalorder %s565_s15, 4  ;;  %p639_p10 = por %p113_p7, %p36_p0 }
  0x11   : > { %p643_p11 = por %p119_p8, %p42_p3  ;;  %s648_s26 = sand.u32 1, %s561_s14  }
  0x12   : > { %s814_s24 = scalar_select %p639_p10, 1, 0 }
  0x13   : > { %s815_s25 = scalar_select %p643_p11, 1, 0 }
  0x14   : > { %s367_s27 = sshll.u32 %s565_s15, 7  ;;  %s366_s28 = sshll.u32 %s648_s26, 3 }
  0x15   : > { %s657_s4 = scalar_lea.hbm %s806_s0, %s367_s27  ;;  %s146_s5 = scalar_lea.vmem [#allocation2], %s366_s28 }
  0x16   : > { %s153_s6 = sshll.u32 %s146_s5, 4  ;;  %p663_p12 = pnand %p397_p9, %p629_p5  ;;  %s667_s6 = int_to_ptr.vmem [resolvable:$true] %s153_s6 }
  0x17   : > { %s143_s8 = scalar_lea.sflag [#allocation3], %s648_s26  ;;  %s435_s9 = scalar_lea.hbm %s657_s4, 128 }
  0x18   : > { %p436_p1 = scmp.ne.s32.totalorder %s657_s4, %s435_s9  ;;  %p437_p2 = pneg %p663_p12 }
  0x19   : > { %s440_s17 = scalar_lea.hbm %s806_s0, 512  ;;  %p441_p5 = scmp.lt.u32.totalorder %s657_s4, %s806_s0 }
  0x1a   : > { %p438_p3 = pnand %p437_p2, %p436_p1  ;;  %p442_p7 = scmp.lt.u32.totalorder %s440_s17, %s435_s9 }
  0x1b   : > { %p444_p9 = scmp.lt.u32.totalorder %s435_s9, %s657_s4 }
  0x1c   : > { %p439_p4 = pneg %p438_p3  ;;  %p443_p8 = por %p442_p7, %p441_p5 }
  0x1e   : > { %p445_p13 = por %p444_p9, %p443_p8 }
  0x20   : > { %p446_p0 = pnand %p445_p13, %p439_p4 }
  0x22   : > { %449 = shalt.err (!%p446_p0)
}
  0x23   : > { %s450_s22 = scalar_lea.vmem %s667_s6, 128  ;;  %s567_s29 = smov [#allocation2]  }
  0x24   : > { %p451_p1 = scmp.ne.s32.totalorder %s667_s6, %s450_s22  ;;  %s455_s30 = sshll.u32 %s567_s29, 4  ;;  %s456_s30 = int_to_ptr.vmem [resolvable:$false] %s455_s30 }
  0x25   : > { %s457_s5 = scalar_lea.vmem %s456_s30, 256  ;;  %p458_p10 = scmp.lt.s32.totalorder %s667_s6, %s456_s30 }
  0x26   : > { %p453_p3 = pnand %p451_p1, %p437_p2  ;;  %p459_p5 = scmp.lt.s32.totalorder %s457_s5, %s450_s22 }
  0x28   : > { %p454_p11 = pneg %p453_p3  ;;  %p460_p7 = por %p459_p5, %p458_p10 }
  0x2a   : > { %p461_p8 = pnand %p460_p7, %p454_p11 }
  0x2c   : > { %464 = shalt.err (!%p461_p8)
}
  0x2d   : > { %389 = dma.hbm_to_vmem [thread:$0]  (!%p663_p12), %s657_s4, 128, %s667_s6, %s143_s8  }
  0x2e   : > { %p817_p13 = scmp.lt.s32.totalorder %s565_s15, 5  ;;  %p818_p0 = scmp.ge.s32.totalorder %s565_s15, 1 }
  0x2f   : > { %s710_s17 = scalar_lea.hbm %s807_s1, %s367_s27  ;;  %s164_s19 = scalar_lea.vmem [#allocation5], %s366_s28 }
  0x30   : > { %p701_p4 = pnand %p818_p0, %p817_p13  ;;  %s171_s20 = sshll.u32 %s164_s19, 4  ;;  %s172_s20 = int_to_ptr.vmem [resolvable:$true] %s171_s20 }
  0x31   : > { %s161_s4 = scalar_lea.sflag [#allocation6], %s648_s26  ;;  %s465_s6 = scalar_lea.hbm %s710_s17, 128 }
  0x32   : > { %s819_s9 = scalar_select %p701_p4, 1, 0 }
  0x33   : > { %p466_p10 = scmp.ne.s32.totalorder %s710_s17, %s465_s6  ;;  %s470_s27 = scalar_lea.hbm %s807_s1, 512 }
  0x34   : > { %p471_p1 = scmp.lt.u32.totalorder %s710_s17, %s807_s1  ;;  %p472_p3 = scmp.lt.u32.totalorder %s470_s27, %s465_s6 }
  0x35   : > { %p468_p11 = pnand %p466_p10, %p437_p2  ;;  %p474_p7 = scmp.lt.u32.totalorder %s465_s6, %s710_s17 }
  0x36   : > { %p473_p5 = por %p472_p3, %p471_p1 }
  0x37   : > { %p469_p9 = pneg %p468_p11 }
  0x38   : > { %p475_p8 = por %p474_p7, %p473_p5 }
  0x3a   : > { %p476_p13 = pnand %p475_p8, %p469_p9 }
  0x3c   : > { %479 = shalt.err (!%p476_p13)
}
  0x3d   : > { %s480_s26 = scalar_lea.vmem %s172_s20, 128  ;;  %s568_s28 = smov [#allocation5]  }
  0x3e   : > { %p481_p0 = scmp.ne.s32.totalorder %s172_s20, %s480_s26  ;;  %s485_s5 = sshll.u32 %s568_s28, 4  ;;  %s486_s5 = int_to_ptr.vmem [resolvable:$false] %s485_s5 }
  0x3f   : > { %s487_s10 = scalar_lea.vmem %s486_s5, 256  ;;  %p488_p6 = scmp.lt.s32.totalorder %s172_s20, %s486_s5 }
  0x40   : > { %p483_p10 = pnand %p481_p0, %p437_p2  ;;  %p489_p4 = scmp.lt.s32.totalorder %s487_s10, %s480_s26 }
  0x42   : > { %p484_p11 = pneg %p483_p10  ;;  %p490_p1 = por %p489_p4, %p488_p6 }
  0x44   : > { %p491_p3 = pnand %p490_p1, %p484_p11 }
  0x46   : > { %494 = shalt.err (!%p491_p3)
}
  0x47   : > { %392 = dma.hbm_to_vmem [thread:$0]  (!%p663_p12), %s710_s17, 128, %s172_s20, %s161_s4  }
  0x48   : > { %p820_p9 = scmp.ne.s32.totalorder %s819_s9, 0 }
  0x49   : > { %s737_s11 = sand.u32 (!%p820_p9), 1, %s557_s13   ;;  %p821_p6 = scmp.ne.s32.totalorder (!%p820_p9), %s813_s23, 0 }
  0x4a   : > { %180 = sbr.rel (%p820_p9) target bundleno = 426 (0x1aa), region = 32  ;;  %s740_s19 = sshll.u32 (!%p820_p9), %s737_s11, 3 }
  0x4b   : > { %s183_s6 = scalar_lea.sflag (!%p820_p9), [#allocation3], %s737_s11  ;;  %s186_s8 = scalar_lea.vmem (!%p820_p9), [#allocation2], %s740_s19 }
  0x51   : > { %540 = dma.done.wait (%p821_p6), %s183_s6, 128  }
  0x52   : > { %542 = vsyncadd (%p821_p6), %s183_s6, 4294967168  ;;  %s192_s7 = scalar_lea.sflag [#allocation6], %s737_s11  ;;  %s195_s9 = scalar_lea.vmem [#allocation5], %s740_s19 }
  0x53   : > { %544 = dma.done.wait (%p821_p6), %s192_s7, 128  }
  0x54   : > { %546 = vsyncadd (%p821_p6), %s192_s7, 4294967168  ;;  %s374_s17 = sshll.u32 %s611_s16, 3  ;;  %v227_v0 = vlaneseq  ;;  %v223_v4 = vld [vmem:[%s186_s8] sm:$0xff]  ;;  %v224_v11 = vld [vmem:[%s195_s9] sm:$0xff]  ;;  %s377_s4 = sshll.u32 %s611_s16, 7 }
  0x55   : > { %v229_v1 = vstv %s374_s17  ;;  %v375_v18 = vld [vmem:[%s808_s2] ss:$0 sm:$0xff]  ;;  %s222_s22 = scalar_lea.vmem [#allocation7], %s740_s19  ;;  %s763_s26 = scalar_lea.hbm %s809_s3, %s377_s4 }
  0x56   : > { %v228_v2 = vshrl.u32 %v227_v0, 7  ;;  %s270_s27 = sshll.u32 %s222_s22, 4  ;;  %s257_s28 = scalar_lea.sflag [#allocation4], %s737_s11  ;;  %s765_s27 = int_to_ptr.vmem [resolvable:$true] %s270_s27 }
  0x57   : > { %s495_s5 = scalar_lea.vmem %s765_s27, 128  ;;  %p822_p2 = scmp.ne.s32.totalorder %s814_s24, 0 }
  0x58   : > { %v230_v3 = vadd.s32 %v229_v1, %v228_v2  ;;  %p496_p12 = scmp.ne.s32.totalorder %s765_s27, %s495_s5  ;;  %s569_s16 = smov [#allocation7]  }
  0x59   : > { %s499_s10 = sshll.u32 %s569_s16, 4  ;;  %s500_s10 = int_to_ptr.vmem [resolvable:$false] %s499_s10 }
  0x5a   : > { %vm231_vm0 = vcmp.lt.s32.totalorder %v230_v3, 32  ;;  %p497_p4 = pnand %p496_p12, %p822_p2  ;;  %s501_s19 = scalar_lea.vmem %s500_s10, 256 }
  0x5b   : > { %v232_v5 = vsel %vm231_vm0, %v223_v4, 0.0  ;;  %v233_v13 = vsel %vm231_vm0, %v224_v11, 0.0  ;;  %p502_p7 = scmp.lt.s32.totalorder %s765_s27, %s500_s10  ;;  %p503_p8 = scmp.lt.s32.totalorder %s501_s19, %s495_s5 }
  0x5c   : > { %234 = vmax.xlane.f32.xlu0 %v232_v5  ;;  %v245_v15 = vsub.f32 0.0, %v233_v13  ;;  %p498_p5 = pneg %p497_p4 }
  0x5d   : > { %p504_p13 = por %p503_p8, %p502_p7 }
  0x5f   : > { %p505_p0 = pnand %p504_p13, %p498_p5 }
  0xe9   : > { %v235_v6 = vpop.xlane.xlu0 %234 }
  0xea   : > { %v236_v7 = vsub.f32 %v232_v5, %v235_v6 }
  0xec   : > { %v237_v8 = vmul.f32 1.442695, %v236_v7 }
  0xee   : > { %431 = vpow2.f32 %v237_v8 }
  0xf8   : > { %v432_v9 = vpop.eup %431 }
  0xf9   : > { %239 = vadd.xlane.f32.xlu0 %v432_v9 }
 0x186   : > { %v240_v10 = vpop.xlane.xlu0 %239 }
 0x187   : > { %433 = vlog2.f32 %v240_v10 }
 0x191   : > { %v434_v12 = vpop.eup %433 }
 0x192   : > { %v242_v14 = vmul.f32 0.6931472, %v434_v12 }
 0x194   : > { %v243_v16 = vsub.f32 %v236_v7, %v242_v14 }
 0x196   : > { %v244_v17 = vmax.f32 %v243_v16, -18.420681 }
 0x198   : > { %v246_v19 = vmul.f32 %v245_v15, %v244_v17 }
 0x19a   : > { %v253_v20 = vmul.f32 %v375_v18, %v246_v19 }
 0x19c   : > { %255 = vst [vmem:[%s222_s22] sm:$0xff] %v253_v20 }
 0x19d   : > { %508 = shalt.err (!%p505_p0)
}
 0x19e   : > { %s509_s11 = scalar_lea.hbm %s763_s26, 128  ;;  %s513_s7 = scalar_lea.hbm %s809_s3, 512 }
 0x19f   : > { %p510_p10 = scmp.ne.s32.totalorder %s763_s26, %s509_s11  ;;  %p514_p3 = scmp.lt.u32.totalorder %s763_s26, %s809_s3 }
 0x1a0   : > { %p515_p9 = scmp.lt.u32.totalorder %s513_s7, %s509_s11  ;;  %p517_p12 = scmp.lt.u32.totalorder %s509_s11, %s763_s26 }
 0x1a1   : > { %p511_p11 = pnand %p510_p10, %p822_p2 }
 0x1a2   : > { %p516_p6 = por %p515_p9, %p514_p3 }
 0x1a3   : > { %p512_p1 = pneg %p511_p11 }
 0x1a4   : > { %p518_p4 = por %p517_p12, %p516_p6 }
 0x1a6   : > { %p519_p5 = pnand %p518_p4, %p512_p1 }
 0x1a8   : > { %522 = shalt.err (!%p519_p5)
}
 0x1a9   : > { %384 = dma.vmem_to_hbm [thread:$0]  (%p822_p2), %s765_s27, 128, %s763_s26, %s257_s28  }
 0x1aa PF: > { %p398_p7 = scmp.ge.s32.totalorder %s565_s15, 2  ;;  %s282_s23 = sand.u32 1, %s553_s12  }
 0x1ab   : > { %p823_p8 = scmp.ne.s32.totalorder %s815_s25, 0  ;;  %s283_s20 = scalar_lea.sflag [#allocation4], %s282_s23 }
 0x1ad   : > { %p394_p13 = pnand %p398_p7, %p823_p8 }
 0x1af   : > { %548 = dma.done.wait (!%p394_p13), %s283_s20, 128  }
 0x1b0   : > { %550 = vsyncadd (!%p394_p13), %s283_s20, 4294967168  ;;  %p19_p0 = scmp.ge.s32.totalorder %s615_s18, 6   ;;  %s824_s12 = smov %s557_s13 }
 0x1b1   : > { %s825_s13 = smov %s561_s14  ;;  %s826_s14 = smov %s627_s21 }
 0x1b2   : > { %s827_s15 = smov %s615_s18  ;;  %21 = sbr.rel (!%p19_p0) target bundleno = 7 (0x7), region = 90 }
 0x1b9   :  { %288 = vsyncpa [#allocation3], 1 }
 0x1ba   :  { %290 = vsyncpa [#allocation3 + $0x1], 1 }
 0x1bb   :  { %291 = vsyncpa [#allocation6], 1 }
 0x1bc   :  { %293 = vsyncpa [#allocation6 + $0x1], 1 }
 0x1bd   :  { %294 = vsyncpa [#allocation4], 1 }
 0x1be   :  { %296 = vsyncpa [#allocation4 + $0x1], 1 }

</bundles_post_ra>
